<compile_context>
chip_gen: v5e
topology: v5e:2x2
jax: 0.10.0
libtpu: 0.0.40
codegen_flags: <defaults>
</compile_context>

<pallas_src>
import jax
import jax.numpy as jnp
from jax.experimental import pallas as pl
from jax.experimental.pallas import tpu as pltpu


def _make_kernel(normalize_attn: bool):
    def kernel(w_ref, l_ref, g_ref, c_ref, gout_ref):
        # w_ref:    (C, 1)       1x1-conv weight (channels on sublanes)
        # l_ref:    (BN, C, S)   local features  (native dtype)
        # g_ref:    (BN, C, S)   global features (native dtype)
        # c_ref:    (BN, S)      raw attention logits (pre-softmax/sigmoid)
        # gout_ref: (BN, C)      attended feature vectors
        lf = l_ref[...].astype(jnp.float32)
        gf = g_ref[...].astype(jnp.float32)
        w = w_ref[...].astype(jnp.float32)                      # (C, 1)
        # Rank-1 channel projection: VPU multiply + XLU sublane reduce.
        #   c[b, s] = sum_c w[c] * (l + g)[b, c, s]
        c = jnp.sum((lf + gf) * w[None, :, :], axis=1)          # (BN, S)
        if normalize_attn:
            m = jnp.max(c, axis=-1, keepdims=True)              # (BN, 1)  XLU
            e = jnp.exp(c - m)                                   # (BN, S)  EUP
            denom = jnp.sum(e, axis=-1, keepdims=True)           # (BN, 1)  XLU
            # softmax(c) . l  ==  (e . l) / denom ; factoring 1/denom out of the
            # spatial reduce saves a (BN, S)-wide VPU multiply.
            weighted = jnp.sum(e[:, None, :] * lf, axis=-1)      # (BN, C)
            gout = weighted * pl.reciprocal(denom, approx=True)
        else:
            a = jax.nn.sigmoid(c)                                 # (BN, S)
            # adaptive_avg_pool2d(..., (1, 1)) == mean over the spatial axis.
            gout = jnp.mean(a[:, None, :] * lf, axis=-1)          # (BN, C)
        c_ref[...] = c.astype(c_ref.dtype)
        gout_ref[...] = gout.astype(gout_ref.dtype)

    return kernel


def _round_up(x, m):
    return -(-x // m) * m


def _vmem_limit_bytes():
    """Scoped-VMEM limit, re-derived per TPU generation (v7x: 64 MiB/TC,
    v5e/v6e: 128 MiB), with headroom left for compiler scratch."""
    try:
        cap = pltpu.get_tpu_info().vmem_capacity_bytes
    except Exception:  # interpret mode / API drift: assume the smallest (v7x)
        cap = 64 * 1024 * 1024
    return min((cap * 3) // 4, 100 * 1024 * 1024)


def _choose_batch_block(N, C, S, in_itemsize, vmem_limit):
    """Pick (batch_block, padded_batch) for the 1-D batch grid.

    The block is a multiple of 8 (keeps the 2-D output blocks sublane-legal)
    unless it covers the whole un-padded batch in a single grid step.
    """
    io = 2 * (2 * C * S * in_itemsize + (S + C) * 4)   # double-buffered blocks
    tmp = 3 * C * S * 4                                # f32 working copies
    per_elem = io + tmp
    budget = vmem_limit // 2                           # headroom for scratch/spills
    cap = max(1, budget // per_elem)

    if N <= cap:
        # Whole batch fits in one step.  Split into two steps only when that is
        # padding-free (HBM traffic stays minimal; megacore can shard on v7x).
        if N >= 16 and N % 16 == 0:
            return N // 2, N
        return N, N

    # Multi-step: minimal batch padding first (this kernel is memory-bound),
    # then the largest block size that keeps that minimal padding.
    n_pad = _round_up(N, 8)
    cap8 = max(8, (cap // 8) * 8)
    bn = 8
    for b in range(8, min(cap8, n_pad) + 1, 8):
        if n_pad % b == 0:
            bn = b
    # TODO(synk): if even bn=8 overflows the VMEM budget (very large C*S), tile
    # the spatial axis with an online softmax instead of relying on headroom.
    return bn, n_pad


def linear_attention_block(l, g, conv_weight, normalize_attn=True):
    """l, g: (N, C, W, H); conv_weight: (1, C, 1, 1).

    Returns (c, g_out) with c: (N, 1, W, H) the raw 1x1-conv logits and
    g_out: (N, C), matching the PyTorch module's forward semantics.
    """
    N, C, W, H = l.shape
    S = W * H
    # Lane-dense (N, C, S) views; inputs keep their native dtype (bf16 stays
    # bf16 -> half the HBM read traffic), the kernel accumulates in f32.
    l_f = l.reshape(N, C, S)
    g_f = g.reshape(N, C, S)
    w = conv_weight.reshape(C, 1).astype(jnp.float32)

    vmem_limit = _vmem_limit_bytes()
    bn, n_pad = _choose_batch_block(N, C, S, l_f.dtype.itemsize, vmem_limit)
    if n_pad > N:
        pad = ((0, n_pad - N), (0, 0), (0, 0))
        l_f = jnp.pad(l_f, pad)
        g_f = jnp.pad(g_f, pad)
    grid = (n_pad // bn,)

    kernel = _make_kernel(normalize_attn)

    c_out, g_out = pl.pallas_call(
        kernel,
        out_shape=(
            jax.ShapeDtypeStruct((n_pad, S), jnp.float32),
            jax.ShapeDtypeStruct((n_pad, C), jnp.float32),
        ),
        grid=grid,
        in_specs=[
            pl.BlockSpec((C, 1), lambda n: (0, 0)),          # shared conv weight
            pl.BlockSpec((bn, C, S), lambda n: (n, 0, 0)),   # l, batch-block tile
            pl.BlockSpec((bn, C, S), lambda n: (n, 0, 0)),   # g, batch-block tile
        ],
        out_specs=(
            pl.BlockSpec((bn, S), lambda n: (n, 0)),         # logits, lane-dense
            pl.BlockSpec((bn, C), lambda n: (n, 0)),         # g_out, lane-dense
        ),
        compiler_params=pltpu.CompilerParams(
            dimension_semantics=("parallel",),
            vmem_limit_bytes=vmem_limit,
        ),
    )(w, l_f, g_f)

    if n_pad > N:
        c_out = c_out[:N]
        g_out = g_out[:N]
    return c_out.reshape(N, 1, W, H), g_out


def _reference(l, g, conv_weight, normalize_attn=True):
    # Pure-JAX reference mirroring the PyTorch forward.
    N, C, W, H = l.shape
    w = conv_weight.reshape(1, C).astype(jnp.float32)
    x = (l + g).reshape(N, C, -1).astype(jnp.float32)        # (N, C, S)
    c = jnp.einsum("oc,ncs->nos", w, x)                       # (N, 1, S)
    lf = l.reshape(N, C, -1).astype(jnp.float32)
    if normalize_attn:
        a = jax.nn.softmax(c, axis=2)
        gout = jnp.sum(a * lf, axis=2)                        # (N, C)
    else:
        a = jax.nn.sigmoid(c)
        gout = jnp.mean(a * lf, axis=2)
    return c.reshape(N, 1, W, H), gout


if __name__ == "__main__":
    N, C, W, H = 2, 4, 16, 16
    key = jax.random.PRNGKey(0)
    k_l, k_g, k_w = jax.random.split(key, 3)
    l = jax.random.normal(k_l, (N, C, W, H), dtype=jnp.float32)
    g = jax.random.normal(k_g, (N, C, W, H), dtype=jnp.float32)
    # Conv2d(C, 1, kernel_size=1, bias=False) weight: (1, C, 1, 1)
    bound = 1.0 / (C ** 0.5)
    conv_weight = jax.random.uniform(
        k_w, (1, C, 1, 1), dtype=jnp.float32, minval=-bound, maxval=bound
    )

    # normalize_attn=True (module default)
    c_out, g_out = linear_attention_block(l, g, conv_weight, normalize_attn=True)
    jax.block_until_ready((c_out, g_out))
    c_ref, g_ref = _reference(l, g, conv_weight, normalize_attn=True)
    assert c_out.shape == (N, 1, W, H) and g_out.shape == (N, C)
    assert jnp.allclose(c_out, c_ref, atol=1e-5, rtol=1e-5)
    # looser tolerance: softmax denominator uses the approximate EUP reciprocal
    assert jnp.allclose(g_out, g_ref, atol=2e-3, rtol=2e-3)

    # normalize_attn=False (sigmoid + spatial mean) path
    c_out2, g_out2 = linear_attention_block(l, g, conv_weight, normalize_attn=False)
    jax.block_until_ready((c_out2, g_out2))
    c_ref2, g_ref2 = _reference(l, g, conv_weight, normalize_attn=False)
    assert jnp.allclose(c_out2, c_ref2, atol=1e-5, rtol=1e-5)
    assert jnp.allclose(g_out2, g_ref2, atol=1e-5, rtol=1e-5)

    print("KERNEL_OK")
</pallas_src>

<mosaic_0001>
module attributes {stable_mosaic.version = 11 : i64} {
  func.func @kernel(%arg0: i32, %arg1: memref<4x1xf32, #tpu.memory_space<vmem>>, %arg2: memref<2x4x256xf32, #tpu.memory_space<vmem>>, %arg3: memref<2x4x256xf32, #tpu.memory_space<vmem>>, %arg4: memref<2x256xf32, #tpu.memory_space<vmem>>, %arg5: memref<2x4xf32, #tpu.memory_space<vmem>>) attributes {dimension_semantics = [#tpu.dimension_semantics<parallel>], iteration_bounds = array<i64: 1>, scalar_prefetch = 0 : i64, scratch_operands = 0 : i64, tpu.core_type = #tpu.core_type<tc>, window_params = [{pipeline_mode = #tpu.pipeline_mode<synchronous>, transform_indices = @transform_0, window_bounds = array<i64: 4, 1>}, {transform_indices = @transform_1, window_bounds = array<i64: 2, 4, 256>}, {transform_indices = @transform_2, window_bounds = array<i64: 2, 4, 256>}, {transform_indices = @transform_3, window_bounds = array<i64: 2, 256>}, {transform_indices = @transform_4, window_bounds = array<i64: 2, 4>}]} {
    %c0 = arith.constant 0 : index
    %c0_0 = arith.constant 0 : index
    %c0_1 = arith.constant 0 : index
    %0 = vector.load %arg2[%c0, %c0_0, %c0_1] : memref<2x4x256xf32, #tpu.memory_space<vmem>>, vector<2x4x256xf32>
    %c0_2 = arith.constant 0 : index
    %c0_3 = arith.constant 0 : index
    %c0_4 = arith.constant 0 : index
    %1 = vector.load %arg3[%c0_2, %c0_3, %c0_4] : memref<2x4x256xf32, #tpu.memory_space<vmem>>, vector<2x4x256xf32>
    %c0_5 = arith.constant 0 : index
    %c0_6 = arith.constant 0 : index
    %2 = vector.load %arg1[%c0_5, %c0_6] : memref<4x1xf32, #tpu.memory_space<vmem>>, vector<4x1xf32>
    %3 = arith.addf %0, %1 : vector<2x4x256xf32>
    %4 = vector.shape_cast %2 : vector<4x1xf32> to vector<1x4x1xf32>
    %5 = vector.broadcast %4 : vector<1x4x1xf32> to vector<2x4x256xf32>
    %6 = arith.mulf %3, %5 : vector<2x4x256xf32>
    %cst = arith.constant dense<0.000000e+00> : vector<2x256xf32>
    %7 = vector.multi_reduction <add>, %6, %cst [1] : vector<2x4x256xf32> to vector<2x256xf32>
    %cst_7 = arith.constant dense<0xFF800000> : vector<2xf32>
    %8 = vector.multi_reduction <maximumf>, %7, %cst_7 [1] : vector<2x256xf32> to vector<2xf32>
    %9 = vector.shape_cast %8 : vector<2xf32> to vector<2x1xf32>
    %10 = vector.broadcast %9 : vector<2x1xf32> to vector<2x256xf32>
    %11 = arith.subf %7, %10 : vector<2x256xf32>
    %12 = math.exp %11 : vector<2x256xf32>
    %cst_8 = arith.constant dense<0.000000e+00> : vector<2xf32>
    %13 = vector.multi_reduction <add>, %12, %cst_8 [1] : vector<2x256xf32> to vector<2xf32>
    %14 = vector.shape_cast %13 : vector<2xf32> to vector<2x1xf32>
    %15 = vector.shape_cast %12 : vector<2x256xf32> to vector<2x1x256xf32>
    %16 = vector.broadcast %15 : vector<2x1x256xf32> to vector<2x4x256xf32>
    %17 = arith.mulf %16, %0 : vector<2x4x256xf32>
    %cst_9 = arith.constant dense<0.000000e+00> : vector<2x4xf32>
    %18 = vector.multi_reduction <add>, %17, %cst_9 [2] : vector<2x4x256xf32> to vector<2x4xf32>
    %19 = tpu.reciprocal %14 {approx = true} : vector<2x1xf32> -> vector<2x1xf32>
    %20 = vector.broadcast %19 : vector<2x1xf32> to vector<2x4xf32>
    %21 = arith.mulf %18, %20 : vector<2x4xf32>
    %c0_10 = arith.constant 0 : index
    %c0_11 = arith.constant 0 : index
    %22 = vector.load %arg4[%c0_10, %c0_11] : memref<2x256xf32, #tpu.memory_space<vmem>>, vector<2x256xf32>
    tpu.vector_store %arg4[%c0_10, %c0_11], %7 {strides = array<i32>} : memref<2x256xf32, #tpu.memory_space<vmem>>, vector<2x256xf32>,
    %c0_12 = arith.constant 0 : index
    %c0_13 = arith.constant 0 : index
    %23 = vector.load %arg5[%c0_12, %c0_13] : memref<2x4xf32, #tpu.memory_space<vmem>>, vector<2x4xf32>
    tpu.vector_store %arg5[%c0_12, %c0_13], %21 {strides = array<i32>} : memref<2x4xf32, #tpu.memory_space<vmem>>, vector<2x4xf32>,
    return
  }
  func.func @transform_0(%arg0: i32) -> (i32, i32) {
    %c0_i32 = arith.constant 0 : i32
    %c0_i32_0 = arith.constant 0 : i32
    %c0_i32_1 = arith.constant 0 : i32
    return %c0_i32, %c0_i32_0 : i32, i32
  }
  func.func @transform_1(%arg0: i32) -> (i32, i32, i32) {
    %c0_i32 = arith.constant 0 : i32
    %c0_i32_0 = arith.constant 0 : i32
    %c0_i32_1 = arith.constant 0 : i32
    return %arg0, %c0_i32, %c0_i32_0 : i32, i32, i32
  }
  func.func @transform_2(%arg0: i32) -> (i32, i32, i32) {
    %c0_i32 = arith.constant 0 : i32
    %c0_i32_0 = arith.constant 0 : i32
    %c0_i32_1 = arith.constant 0 : i32
    return %arg0, %c0_i32, %c0_i32_0 : i32, i32, i32
  }
  func.func @transform_3(%arg0: i32) -> (i32, i32) {
    %c0_i32 = arith.constant 0 : i32
    %c0_i32_0 = arith.constant 0 : i32
    return %arg0, %c0_i32 : i32, i32
  }
  func.func @transform_4(%arg0: i32) -> (i32, i32) {
    %c0_i32 = arith.constant 0 : i32
    %c0_i32_0 = arith.constant 0 : i32
    return %arg0, %c0_i32 : i32, i32
  }
}

</mosaic_0001>

<bundles_post_ra>
// kernel: tpu_custom_call.1
= control target key start
LH: loop header
LB: loop body
LE: loop exit
PB: predicated region body
PF: predicated region fallthrough
CT: control target
= control target key end

     0   :  { %10 = vsyncpa [#allocation3], 0  ;;  %s456_s0 = inlined_call_operand.vmem [shape: f32[4,1], index: 0, kind: input, shape index: {}]   ;;  %s457_s1 = inlined_call_operand.hbm [shape: f32[2,4,256], index: 1, kind: input, shape index: {}]   ;;  %s458_s2 = inlined_call_operand.hbm [shape: f32[2,4,256], index: 2, kind: input, shape index: {}]   ;;  %s459_s3 = inlined_call_operand.hbm [shape: f32[2,256], index: 3, kind: output, shape index: {0}]   ;;  %s460_s4 = inlined_call_operand.hbm [shape: f32[2,4], index: 4, kind: output, shape index: {1}]  }
   0x1   :  { %11 = vsyncpa [#allocation6], 0 }
   0x2   :  { %12 = vsyncpa [#allocation4], 0 }
   0x3   :  { %13 = vsyncpa [#allocation9], 0  ;;  %s20_s17 = sshll.u32 %s457_s1, 4  ;;  %s388_s18 = smov [#allocation2]   ;;  %s21_s17 = int_to_ptr.hbm [resolvable:$true] %s20_s17 }
   0x4   :  { %s22_s19 = sshll.u32 %s388_s18, 4  ;;  %s33_s22 = sshll.u32 %s458_s2, 4  ;;  %s23_s19 = int_to_ptr.vmem [resolvable:$true] %s22_s19  ;;  %s34_s22 = int_to_ptr.hbm [resolvable:$true] %s33_s22 }
   0x5   :  { %s389_s23 = smov 128   ;;  %s390_s24 = smov 8  }
   0x6   :  { %28 = dma.hbm_to_vmem [thread:$0]  %s21_s17, 256, %s23_s19, [#allocation3], %s389_s23, %s389_s23, %s390_s24  }
   0x7   :  { %s391_s25 = smov [#allocation5]  }
   0x8   :  { %s35_s26 = sshll.u32 %s391_s25, 4  ;;  %s36_s26 = int_to_ptr.vmem [resolvable:$true] %s35_s26 }
   0x9   :  { %41 = dma.hbm_to_vmem [thread:$0]  %s34_s22, 256, %s36_s26, [#allocation6], %s389_s23, %s389_s23, %s390_s24  }
   0xa   :  { %380 = dma.done.wait [#allocation3], 256  }
   0xb   :  { %381 = vsyncadd [#allocation3], 4294967040 }
   0xc   :  { %382 = dma.done.wait [#allocation6], 256  }
   0xd   :  { %383 = vsyncadd [#allocation6], 4294967040  ;;  %v392_v0 = vmov 0   ;;  %v54_v1 = vld [vmem:[%s456_s0] sm:$0xf]  ;;  %v50_v4 = vld [vmem:[#allocation2] sm:$0xff] }
   0xe   :  { %271 = vset.pattern.permute.xlu0 %v392_v0  ;;  %273 = vset.pattern.permute.xlu1 %v392_v0  ;;  %v393_v2 = vmov 839922192   ;;  %v51_v5 = vld [vmem:[#allocation2 + $0x8] sm:$0xff]  ;;  %v52_v6 = vld [vmem:[#allocation5] sm:$0xff]  ;;  %v53_v7 = vld [vmem:[#allocation5 + $0x8] sm:$0xff]  ;;  %vm81_vm0 = vcmask 1043456  }
   0xf   :  { %272 = vset.pattern.permute.xlu2 %v392_v0  ;;  %59 = vperm.xlu0 %271, %v54_v1   ;;  %v62_v3 = vunpack.c.l.s4 %v393_v2  ;;  %v55_v9 = vadd.f32 %v52_v6, %v50_v4  ;;  %v56_v10 = vadd.f32 %v53_v7, %v51_v5  ;;  %vm114_vm1 = vcmask 1041409   ;;  %s394_s0 = smov [#allocation7]   ;;  %s236_s30 = sshll.u32 %s459_s3, 4  ;;  %s237_s30 = int_to_ptr.hbm [resolvable:$true] %s236_s30 }
  0x10   :  { %vm119_vm2 = vcmask 1041408   ;;  %vm205_vm3 = vcmask 1043459   ;;  %vm207_vm4 = vcmask 1045509   ;;  %vm209_vm5 = vcmask 1047559   ;;  %s234_s2 = sshll.u32 %s394_s0, 4  ;;  %s395_s5 = smov [#allocation8]   ;;  %s235_s2 = int_to_ptr.vmem [resolvable:$true] %s234_s2 }
  0x11   :  { %v63_v8 = vunpack.c.0.s8 %v62_v3  ;;  %s245_s6 = sshll.u32 %s395_s5, 4  ;;  %s247_s3 = sshll.u32 %s460_s4, 4  ;;  %vm227_vm6 = vcmask 25600   ;;  %s246_s6 = int_to_ptr.vmem [resolvable:$true] %s245_s6  ;;  %s248_s3 = int_to_ptr.hbm [resolvable:$true] %s247_s3 }
  0x81   :  { %v60_v11 = vpop.permute.xlu0 %59 }
  0x82   :  { %v64_v12 = vperm.slane %v60_v11, %v63_v8 }
  0x84   :  { %v66_v13 = vmul.f32 %v64_v12, %v55_v9  ;;  %v67_v14 = vmul.f32 %v64_v12, %v56_v10 }
  0x86   :  { %70 = vst [vmem:[#allocation1] ss:$2 sm:$0xff] %v66_v13 }
  0x87   :  { %74 = vst [vmem:[#allocation1 + $0x10] ss:$2 sm:$0xff] %v67_v14 }
  0x8d   :  { %v71_v15 = vld.sshfl [vmem:[#allocation1] sm:$0xff pattern:$0x75316420]  ;;  %v72_v16 = vld.sshfl [vmem:[#allocation1 + $0x8] sm:$0xff pattern:$0x75316420] }
  0x8e   :  { %v75_v17 = vld.sshfl [vmem:[#allocation1 + $0x10] sm:$0xff pattern:$0x75316420]  ;;  %v76_v18 = vld.sshfl [vmem:[#allocation1 + $0x18] sm:$0xff pattern:$0x75316420] }
  0x8f   :  { %162 = vst [vmem:[#allocation1] ss:$2 sm:$0xff] %v50_v4  ;;  %v82_v19 = vsel %vm81_vm0, %v71_v15, 0.0  ;;  %v89_v20 = vsel %vm81_vm0, %v72_v16, 0.0  ;;  %v96_v21 = vsel %vm81_vm0, %v75_v17, 0.0  ;;  %v103_v22 = vsel %vm81_vm0, %v76_v18, 0.0 }
  0x90   :  { %166 = vst [vmem:[#allocation1 + $0x10] ss:$2 sm:$0xff] %v51_v5  ;;  %v83_v23 = vrot.slane %v82_v19, 4  ;;  %v90_v24 = vrot.slane %v89_v20, 4  ;;  %v97_v25 = vrot.slane %v96_v21, 4  ;;  %v104_v26 = vrot.slane %v103_v22, 4 }
  0x92   :  { %v84_v27 = vadd.f32 %v83_v23, %v82_v19  ;;  %v91_v28 = vadd.f32 %v90_v24, %v89_v20  ;;  %v98_v29 = vadd.f32 %v97_v25, %v96_v21  ;;  %v105_v30 = vadd.f32 %v104_v26, %v103_v22 }
  0x94   :  { %v85_v31 = vrot.slane %v84_v27, 2  ;;  %v92_v32 = vrot.slane %v91_v28, 2  ;;  %v99_v33 = vrot.slane %v98_v29, 2  ;;  %v106_v34 = vrot.slane %v105_v30, 2 }
  0x96   :  { %v86_v35 = vadd.f32 %v85_v31, %v84_v27  ;;  %v93_v36 = vadd.f32 %v92_v32, %v91_v28  ;;  %v100_v37 = vadd.f32 %v99_v33, %v98_v29  ;;  %v107_v38 = vadd.f32 %v106_v34, %v105_v30  ;;  %v163_v21 = vld.sshfl [vmem:[#allocation1] sm:$0xff pattern:$0x75316420]  ;;  %v164_v25 = vld.sshfl [vmem:[#allocation1 + $0x8] sm:$0xff pattern:$0x75316420] }
  0x97   :  { %v167_v10 = vld.sshfl [vmem:[#allocation1 + $0x10] sm:$0xff pattern:$0x75316420]  ;;  %v168_v14 = vld.sshfl [vmem:[#allocation1 + $0x18] sm:$0xff pattern:$0x75316420] }
  0x98   :  { %v87_v39 = vrot.slane %v86_v35, 1  ;;  %v94_v40 = vrot.slane %v93_v36, 1  ;;  %v101_v41 = vrot.slane %v100_v37, 1  ;;  %v108_v42 = vrot.slane %v107_v38, 1 }
  0x9a   :  { %v88_v43 = vadd.f32 %v87_v39, %v86_v35  ;;  %v95_v44 = vadd.f32 %v94_v40, %v93_v36  ;;  %v102_v45 = vadd.f32 %v101_v41, %v100_v37  ;;  %v109_v46 = vadd.f32 %v108_v42, %v107_v38 }
  0x9c   :  { %v115_v47 = vsel %vm114_vm1, %v102_v45, %v88_v43  ;;  %v116_v48 = vsel %vm114_vm1, %v109_v46, %v95_v44  ;;  %v195_v49 = vrot.slane %v95_v44, 6  ;;  %v196_v50 = vrot.slane %v109_v46, 6 }
  0x9d   :  { %v120_v51 = vsel %vm119_vm2, %v115_v47, -inf  ;;  %v121_v52 = vsel %vm119_vm2, %v116_v48, -inf }
  0x9e   :  { %v122_v53 = vmax.f32 %v120_v51, %v121_v52  ;;  %v198_v54 = vsel %vm119_vm2, %v102_v45, %v196_v50  ;;  %v197_v56 = vsel %vm119_vm2, %v88_v43, %v195_v49 }
  0x9f   :  { %v203_v55 = vrot.slane %v198_v54, 7 }
  0xa0   :  { %123 = vmax.xlane.f32.xlu0 %v122_v53 }
  0xa1   :  { %v204_v57 = vsel %vm114_vm1, %v203_v55, %v197_v56 }
  0xa2   :  { %v206_v58 = vsel %vm205_vm3, %v203_v55, %v204_v57 }
  0xa3   :  { %v208_v59 = vsel %vm207_vm4, %v203_v55, %v206_v58 }
  0xa4   :  { %v210_v60 = vsel %vm209_vm5, %v203_v55, %v208_v59 }
  0xa5   :  { %212 = vst [vmem:[#allocation7] sm:$0xf] %v210_v60 }
  0xa6   :  { %239 = dma.vmem_to_hbm [thread:$0]  %s235_s2, 64, %s237_s30, [#allocation4]  }
 0x113   :  { %v124_v61 = vpop.xlane.xlu0 %123 }
 0x114   :  { %v126_v62 = vrot.slane %v124_v61, 1  ;;  %v129_v63 = vsub.f32 %v88_v43, %v124_v61  ;;  %v130_v0 = vsub.f32 %v95_v44, %v124_v61  ;;  %v221_v44 = vlaneseq }
 0x116   :  { %v131_v1 = vsub.f32 %v102_v45, %v126_v62  ;;  %v132_v2 = vsub.f32 %v109_v46, %v126_v62  ;;  %v133_v3 = vmul.f32 1.442695, %v129_v63  ;;  %v135_v4 = vmul.f32 1.442695, %v130_v0 }
 0x117   :  { %v222_v45 = vand.u32 127, %v221_v44 }
 0x118   :  { %274 = vpow2.f32 %v133_v3  ;;  %v137_v5 = vmul.f32 1.442695, %v131_v1  ;;  %v139_v6 = vmul.f32 1.442695, %v132_v2 }
 0x119   :  { %276 = vpow2.f32 %v135_v4 }
 0x11a   :  { %278 = vpow2.f32 %v137_v5 }
 0x11b   :  { %280 = vpow2.f32 %v139_v6 }
 0x11e   :  { %v275_v7 = vpop.eup %274 }
 0x11f   :  { %v277_v8 = vpop.eup %276  ;;  %v156_v19 = vperm.slane %v275_v7, 0 }
 0x120   :  { %v279_v9 = vpop.eup %278  ;;  %v157_v20 = vperm.slane %v277_v8, 0 }
 0x121   :  { %v281_v11 = vpop.eup %280  ;;  %v145_v12 = vrot.slane %v279_v9, 7  ;;  %v158_v13 = vperm.slane %v279_v9, 0  ;;  %v173_v31 = vmul.f32 %v163_v21, %v156_v19 }
 0x122   :  { %v147_v15 = vrot.slane %v281_v11, 7  ;;  %v159_v16 = vperm.slane %v281_v11, 0  ;;  %v174_v32 = vmul.f32 %v164_v25, %v157_v20 }
 0x123   :  { %v146_v17 = vsel %vm114_vm1, %v145_v12, %v275_v7  ;;  %v175_v18 = vmul.f32 %v167_v10, %v158_v13  ;;  %v177_v33 = vsel %vm81_vm0, %v173_v31, 0.0 }
 0x124   :  { %v148_v22 = vsel %vm114_vm1, %v147_v15, %v277_v8  ;;  %v151_v23 = vsel %vm119_vm2, %v146_v17, 0.0  ;;  %v176_v24 = vmul.f32 %v168_v14, %v159_v16  ;;  %v178_v34 = vsel %vm81_vm0, %v174_v32, 0.0 }
 0x125   :  { %v152_v26 = vsel %vm119_vm2, %v148_v22, 0.0  ;;  %v182_v27 = vsel %vm81_vm0, %v175_v18, 0.0  ;;  %v179_v35 = vadd.f32 %v178_v34, %v177_v33 }
 0x126   :  { %v153_v28 = vadd.f32 %v152_v26, %v151_v23  ;;  %v183_v29 = vsel %vm81_vm0, %v176_v24, 0.0 }
 0x127   :  { %v184_v30 = vadd.f32 %v183_v29, %v182_v27 }
 0x128   :  { %154 = vadd.xlane.f32.xlu1 %v153_v28 }
 0x129   :  { %185 = vadd.xlane.f32.xlu2 %v184_v30 }
 0x130   :  { %180 = vadd.xlane.f32.xlu1 %v179_v35 }
 0x19b   :  { %v155_v36 = vpop.xlane.xlu1 %154 }
 0x19c   :  { %282 = vrcp.f32 %v155_v36  ;;  %v186_v41 = vpop.xlane.xlu2 %185 }
 0x1a2   :  { %v283_v37 = vpop.eup %282 }
 0x1a3   :  { %v190_v38 = vperm.slane %v283_v37, 1  ;;  %v189_v39 = vperm.slane %v283_v37, 0  ;;  %v181_v40 = vpop.xlane.xlu1 %180 }
 0x1a5   :  { %v194_v42 = vmul.f32 %v190_v38, %v186_v41  ;;  %v193_v43 = vmul.f32 %v189_v39, %v181_v40 }
 0x1a7   :  { %219 = vperm.xlu1 %273, %v194_v42   ;;  %216 = vperm.xlu2 %272, %v193_v43  }
 0x201   :  { %v217_v46 = vpop.permute.xlu2 %216 }
 0x202   :  { %v223_v48 = vperm.slane %v217_v46, %v222_v45 }
 0x219   :  { %v220_v47 = vpop.permute.xlu1 %219 }
 0x21a   :  { %v224_v49 = vperm.slane %v220_v47, %v222_v45 }
 0x21c   :  { %v225_v50 = vsel %vm114_vm1, %v224_v49, %v223_v48 }
 0x21d   :  { %228 = vst.msk [vmem:[#allocation8] sm:$0x3] %vm227_vm6, %v225_v50 }
 0x21e   :  { %250 = dma.vmem_to_hbm [thread:$0]  %s246_s6, 32, %s248_s3, [#allocation9]  }
 0x21f   :  { %384 = dma.done.wait [#allocation4], 64  }
 0x220   :  { %385 = vsyncadd [#allocation4], 4294967232 }
 0x221   :  { %386 = dma.done.wait [#allocation9], 32  }
 0x222   :  { %387 = vsyncadd [#allocation9], 4294967264 }
 0x223   :  { %259 = vsyncpa [#allocation3], 1 }
 0x224   :  { %260 = vsyncpa [#allocation6], 1 }
 0x225   :  { %261 = vsyncpa [#allocation4], 1 }
 0x226   :  { %262 = vsyncpa [#allocation9], 1 }

</bundles_post_ra>
